<compile_context>
chip_gen: v6e
topology: v6e:2x2x1
jax: 0.10.0
libtpu: 0.0.40
codegen_flags: <defaults>
</compile_context>

<pallas_src>
import functools

import jax
import jax.numpy as jnp
from jax.experimental import pallas as pl
from jax.experimental.pallas import tpu as pltpu


def convlstm_kernel(p_ref, c_ref, w_ref, h_out_ref, c_out_ref):
    """Fused im2col-conv + LSTM gate update (channel-major, batch-in-lanes).

    p_ref:     (9*Cin+1, Nblk)  bf16  im2col patches (+ constant-1 bias row)
    c_ref:     (hs, Nblk)       f32   previous cell state
    w_ref:     (4*hs, 9*Cin+1)  bf16  conv weight rows [i|f|o|g], bias as last col
    h_out_ref: (hs, Nblk)       f32   new hidden state
    c_out_ref: (hs, Nblk)       f32   new cell state
    """
    hs = c_ref.shape[0]

    # Single MXU matmul, f32 accumulation.  Bias rides along via the ones row.
    gates = jnp.dot(w_ref[...], p_ref[...], preferred_element_type=jnp.float32)

    # Two wide activation passes; sublane slices at multiples of 8 rows are free.
    # sigmoid(x) == 0.5*tanh(0.5*x)+0.5 -> one EUP tanh per element for i|f|o.
    sig = 0.5 * jnp.tanh(0.5 * gates[:3 * hs, :]) + 0.5
    g_gate = jnp.tanh(gates[3 * hs:, :])

    i_gate = sig[:hs, :]
    f_gate = sig[hs:2 * hs, :]
    o_gate = sig[2 * hs:3 * hs, :]

    cell = f_gate * c_ref[...] + i_gate * g_gate
    h_out_ref[...] = o_gate * jnp.tanh(cell)
    c_out_ref[...] = cell


def pack_convlstm_params(conv_w, conv_b):
    """One-time packing: torch OIHW weight + bias -> (4*hs, 9*Cin+1) bf16 matrix.

    Row-major gate order [i|f|o|g]; column (ky*3+kx)*Cin + c; last column = bias.
    Call this ONCE (outside the per-step jitted forward).
    """
    o, i, kh, kw = conv_w.shape
    w_mat = jnp.transpose(conv_w, (0, 2, 3, 1)).reshape(o, kh * kw * i)
    w_mat = jnp.concatenate([w_mat, conv_b.reshape(o, 1)], axis=1)
    return w_mat.astype(jnp.bfloat16)


def generative_cell_forward(error, top_down_state, state, w_packed,
                            hidden_size, num_groups=1):
    """Pallas implementation of GenerativeCell.forward.

    error:          (B, Ce, H, W)        NCHW, float32
    top_down_state: (B, Cu, H//2, W//2)  NCHW or None
    state:          (prev_hidden, prev_cell), each (B, hidden, H, W) NCHW
    w_packed:       (4*hidden, 9*(Ce+Cu+hidden)+1) bf16 from pack_convlstm_params
    returns (hidden, cell), each (B, hidden, H, W) NCHW, float32
    """
    if top_down_state is not None:
        up = jnp.repeat(jnp.repeat(top_down_state, 2, axis=2), 2, axis=3)
        model_input = jnp.concatenate([error, up], axis=1)
    else:
        model_input = error

    prev_h, prev_c = state
    stacked = jnp.concatenate([model_input, prev_h], axis=1)   # (B, Cin, H, W)
    B, cin, H, W = stacked.shape
    hs = hidden_size
    hw = H * W
    n_total = B * hw
    k_dim = 9 * cin + 1
    assert w_packed.shape == (4 * hs, k_dim)
    assert B % num_groups == 0
    n_blk = n_total // num_groups
    assert n_blk % 128 == 0, "pixels per grid step must be a multiple of 128"

    # bf16 BEFORE the pad/im2col (halves wrapper HBM write traffic), and
    # channel-major-first so the batch folds straight onto the lane axis.
    x_bf = jnp.transpose(stacked, (1, 0, 2, 3)).astype(jnp.bfloat16)   # (Cin,B,H,W)
    xp = jnp.pad(x_bf, ((0, 0), (0, 0), (1, 1), (1, 1)))
    taps = [xp[:, :, dy:dy + H, dx:dx + W].reshape(cin, n_total)
            for dy in range(3) for dx in range(3)]
    ones_row = jnp.ones((1, n_total), jnp.bfloat16)                    # bias row
    patches = jnp.concatenate(taps + [ones_row], axis=0)               # (9Cin+1, B*HW)

    c_flat = jnp.transpose(prev_c, (1, 0, 2, 3)).reshape(hs, n_total)  # f32
    c_flat = c_flat.astype(jnp.float32)

    out_shapes = (jax.ShapeDtypeStruct((hs, n_total), jnp.float32),
                  jax.ShapeDtypeStruct((hs, n_total), jnp.float32))

    h_out, c_out = pl.pallas_call(
        convlstm_kernel,
        out_shape=out_shapes,
        grid_spec=pltpu.PrefetchScalarGridSpec(
            num_scalar_prefetch=0,
            grid=(num_groups,),
            in_specs=[
                pl.BlockSpec((k_dim, n_blk), lambda g: (0, g)),
                pl.BlockSpec((hs, n_blk), lambda g: (0, g)),
                pl.BlockSpec((4 * hs, k_dim), lambda g: (0, 0)),
            ],
            out_specs=[
                pl.BlockSpec((hs, n_blk), lambda g: (0, g)),
                pl.BlockSpec((hs, n_blk), lambda g: (0, g)),
            ],
        ),
        compiler_params=pltpu.CompilerParams(
            dimension_semantics=("parallel",)),
    )(patches, c_flat, w_packed)

    # (hs, B*HW) -> (B, hs, H, W); small transpose, outputs stay f32.
    hidden = jnp.transpose(h_out.reshape(hs, B, H, W), (1, 0, 2, 3))
    cell = jnp.transpose(c_out.reshape(hs, B, H, W), (1, 0, 2, 3))
    return hidden, cell


def pick_num_groups(batch):
    """grid=(2,) on 2-TensorCore chips (v7x) so each core gets one image;
    grid=(1,) (batch fully folded into lanes) on single-TC v5e/v6e."""
    try:
        kind = jax.devices()[0].device_kind.lower()
    except Exception:
        return 1
    if "v7" in kind and batch % 2 == 0:
        return 2
    return 1


def reference_forward(error, top_down_state, state, conv_w, conv_b, hidden_size):
    """Pure-JAX f32 reference mirroring the PyTorch semantics (for validation)."""
    up = jnp.repeat(jnp.repeat(top_down_state, 2, axis=2), 2, axis=3)
    model_input = jnp.concatenate([error, up], axis=1)
    prev_h, prev_c = state
    stacked = jnp.concatenate([model_input, prev_h], axis=1)
    gates = jax.lax.conv_general_dilated(
        stacked, conv_w, window_strides=(1, 1), padding=((1, 1), (1, 1)),
        dimension_numbers=('NCHW', 'OIHW', 'NCHW')) + conv_b.reshape(1, -1, 1, 1)
    hs = hidden_size
    i = jax.nn.sigmoid(gates[:, 0 * hs:1 * hs])
    r = jax.nn.sigmoid(gates[:, 1 * hs:2 * hs])
    o = jax.nn.sigmoid(gates[:, 2 * hs:3 * hs])
    g = jnp.tanh(gates[:, 3 * hs:4 * hs])
    cell = r * prev_c + i * g
    hidden = o * jnp.tanh(cell)
    return hidden, cell


if __name__ == "__main__":
    # input_size = {'error': 4, 'up_state': 4}, hidden_size = 32, spatial 16x16.
    B, Ce, Cu, hs, H, W = 2, 4, 4, 32, 16, 16
    cin_conv = Ce + Cu + hs  # ConvLSTMCell input channels incl. prev_hidden

    key = jax.random.PRNGKey(0)
    k_err, k_top, k_h, k_c, k_w, k_b = jax.random.split(key, 6)

    error = jax.random.normal(k_err, (B, Ce, H, W), jnp.float32)
    top_down_state = jax.random.normal(k_top, (B, Cu, H // 2, W // 2), jnp.float32)
    prev_hidden = jax.random.normal(k_h, (B, hs, H, W), jnp.float32)
    prev_cell = jax.random.normal(k_c, (B, hs, H, W), jnp.float32)

    conv_w = 0.05 * jax.random.normal(k_w, (4 * hs, cin_conv, 3, 3), jnp.float32)
    conv_b = 0.05 * jax.random.normal(k_b, (4 * hs,), jnp.float32)

    # One-time parameter packing (hoisted out of the per-step path).
    w_packed = jax.block_until_ready(pack_convlstm_params(conv_w, conv_b))

    num_groups = pick_num_groups(B)
    fwd = jax.jit(functools.partial(generative_cell_forward,
                                    hidden_size=hs, num_groups=num_groups))
    hidden, cell = fwd(error, top_down_state, (prev_hidden, prev_cell), w_packed)
    jax.block_until_ready((hidden, cell))

    ref_h, ref_c = reference_forward(error, top_down_state,
                                     (prev_hidden, prev_cell),
                                     conv_w, conv_b, hs)

    # bf16 matmul operands (f32 accumulation) -> relaxed tolerance vs the f32 ref.
    assert jnp.allclose(hidden, ref_h, atol=2e-2, rtol=2e-2), \
        float(jnp.max(jnp.abs(hidden - ref_h)))
    assert jnp.allclose(cell, ref_c, atol=2e-2, rtol=2e-2), \
        float(jnp.max(jnp.abs(cell - ref_c)))

    print("KERNEL_OK")
</pallas_src>

<mosaic_0001>
module attributes {stable_mosaic.version = 11 : i64} {
  func.func @convlstm_kernel(%arg0: i32, %arg1: memref<361x512xbf16, #tpu.memory_space<vmem>>, %arg2: memref<32x512xf32, #tpu.memory_space<vmem>>, %arg3: memref<128x361xbf16, #tpu.memory_space<vmem>>, %arg4: memref<32x512xf32, #tpu.memory_space<vmem>>, %arg5: memref<32x512xf32, #tpu.memory_space<vmem>>) attributes {dimension_semantics = [#tpu.dimension_semantics<parallel>], iteration_bounds = array<i64: 1>, scalar_prefetch = 0 : i64, scratch_operands = 0 : i64, tpu.core_type = #tpu.core_type<tc>, window_params = [{transform_indices = @transform_0, window_bounds = array<i64: 361, 512>}, {transform_indices = @transform_1, window_bounds = array<i64: 32, 512>}, {pipeline_mode = #tpu.pipeline_mode<synchronous>, transform_indices = @transform_2, window_bounds = array<i64: 128, 361>}, {transform_indices = @transform_3, window_bounds = array<i64: 32, 512>}, {transform_indices = @transform_4, window_bounds = array<i64: 32, 512>}]} {
    %c0 = arith.constant 0 : index
    %c0_0 = arith.constant 0 : index
    %0 = vector.load %arg3[%c0, %c0_0] : memref<128x361xbf16, #tpu.memory_space<vmem>>, vector<128x361xbf16>
    %c0_1 = arith.constant 0 : index
    %c0_2 = arith.constant 0 : index
    %1 = vector.load %arg1[%c0_1, %c0_2] : memref<361x512xbf16, #tpu.memory_space<vmem>>, vector<361x512xbf16>
    %cst = arith.constant dense<0.000000e+00> : vector<128x512xf32>
    %2 = tpu.matmul %0, %1, %cst {dimension_numbers = #tpu.dot_dimension_numbers<[1], [0], [0], [1], [0, 0, 1, 1], [], []>} : vector<128x361xbf16>, vector<361x512xbf16>, vector<128x512xf32> -> vector<128x512xf32>
    %3 = vector.extract_strided_slice %2 {offsets = [0, 0], sizes = [96, 512], strides = [1, 1]} : vector<128x512xf32> to vector<96x512xf32>
    %cst_3 = arith.constant 5.000000e-01 : f32
    %4 = vector.broadcast %cst_3 : f32 to vector<96x512xf32>
    %5 = arith.mulf %4, %3 : vector<96x512xf32>
    %6 = math.tanh %5 : vector<96x512xf32>
    %cst_4 = arith.constant 5.000000e-01 : f32
    %7 = vector.broadcast %cst_4 : f32 to vector<96x512xf32>
    %8 = arith.mulf %7, %6 : vector<96x512xf32>
    %cst_5 = arith.constant 5.000000e-01 : f32
    %9 = vector.broadcast %cst_5 : f32 to vector<96x512xf32>
    %10 = arith.addf %8, %9 : vector<96x512xf32>
    %11 = vector.extract_strided_slice %2 {offsets = [96, 0], sizes = [32, 512], strides = [1, 1]} : vector<128x512xf32> to vector<32x512xf32>
    %12 = math.tanh %11 : vector<32x512xf32>
    %13 = vector.extract_strided_slice %10 {offsets = [0, 0], sizes = [32, 512], strides = [1, 1]} : vector<96x512xf32> to vector<32x512xf32>
    %14 = vector.extract_strided_slice %10 {offsets = [32, 0], sizes = [32, 512], strides = [1, 1]} : vector<96x512xf32> to vector<32x512xf32>
    %15 = vector.extract_strided_slice %10 {offsets = [64, 0], sizes = [32, 512], strides = [1, 1]} : vector<96x512xf32> to vector<32x512xf32>
    %c0_6 = arith.constant 0 : index
    %c0_7 = arith.constant 0 : index
    %16 = vector.load %arg2[%c0_6, %c0_7] : memref<32x512xf32, #tpu.memory_space<vmem>>, vector<32x512xf32>
    %17 = arith.mulf %14, %16 : vector<32x512xf32>
    %18 = arith.mulf %13, %12 : vector<32x512xf32>
    %19 = arith.addf %17, %18 : vector<32x512xf32>
    %20 = math.tanh %19 : vector<32x512xf32>
    %21 = arith.mulf %15, %20 : vector<32x512xf32>
    %c0_8 = arith.constant 0 : index
    %c0_9 = arith.constant 0 : index
    %22 = vector.load %arg4[%c0_8, %c0_9] : memref<32x512xf32, #tpu.memory_space<vmem>>, vector<32x512xf32>
    tpu.vector_store %arg4[%c0_8, %c0_9], %21 {strides = array<i32>} : memref<32x512xf32, #tpu.memory_space<vmem>>, vector<32x512xf32>,
    %c0_10 = arith.constant 0 : index
    %c0_11 = arith.constant 0 : index
    %23 = vector.load %arg5[%c0_10, %c0_11] : memref<32x512xf32, #tpu.memory_space<vmem>>, vector<32x512xf32>
    tpu.vector_store %arg5[%c0_10, %c0_11], %19 {strides = array<i32>} : memref<32x512xf32, #tpu.memory_space<vmem>>, vector<32x512xf32>,
    return
  }
  func.func @transform_0(%arg0: i32) -> (i32, i32) {
    %c0_i32 = arith.constant 0 : i32
    %c0_i32_0 = arith.constant 0 : i32
    return %c0_i32, %arg0 : i32, i32
  }
  func.func @transform_1(%arg0: i32) -> (i32, i32) {
    %c0_i32 = arith.constant 0 : i32
    %c0_i32_0 = arith.constant 0 : i32
    return %c0_i32, %arg0 : i32, i32
  }
  func.func @transform_2(%arg0: i32) -> (i32, i32) {
    %c0_i32 = arith.constant 0 : i32
    %c0_i32_0 = arith.constant 0 : i32
    %c0_i32_1 = arith.constant 0 : i32
    return %c0_i32, %c0_i32_0 : i32, i32
  }
  func.func @transform_3(%arg0: i32) -> (i32, i32) {
    %c0_i32 = arith.constant 0 : i32
    %c0_i32_0 = arith.constant 0 : i32
    return %c0_i32, %arg0 : i32, i32
  }
  func.func @transform_4(%arg0: i32) -> (i32, i32) {
    %c0_i32 = arith.constant 0 : i32
    %c0_i32_0 = arith.constant 0 : i32
    return %c0_i32, %arg0 : i32, i32
  }
}

</mosaic_0001>

<bundles_post_ra>
// kernel: generative_cell_forward.1
= control target key start
LH: loop header
LB: loop body
LE: loop exit
PB: predicated region body
PF: predicated region fallthrough
CT: control target
= control target key end

     0   :  { %vm742_vm0 = vcmask 1043456   ;;  %vm743_vm1 = vcmask 1044480   ;;  %v2032_v1 = vmov 65535   ;;  %v2033_v3 = vmov 0   ;;  %s2910_s0 = inlined_call_operand.vmem [shape: bf16[361,512], index: 0, kind: input, shape index: {}]   ;;  %s2911_s2 = inlined_call_operand.vmem [shape: bf16[128,361], index: 2, kind: input, shape index: {}]   ;;  %s2912_s1 = inlined_call_operand.vmem [shape: f32[32,512], index: 1, kind: input, shape index: {}]   ;;  %s2913_s4 = inlined_call_operand.vmem [shape: f32[32,512], index: 4, kind: output, shape index: {1}]   ;;  %s2914_s3 = inlined_call_operand.vmem [shape: f32[32,512], index: 3, kind: output, shape index: {0}]  }
   0x1   :  { %v1702_v0 = vld [vmem:[%s2910_s0 + $0xe4] ss:$16 sps:$4 sm:$0xff]   ;;  %v744_v2 = vsel %vm742_vm0, 4294967295, %v2032_v1  ;;  %903 = vmatprep.mubr.bf16.mxu1 %v2033_v3  ;;  %v1704_v4 = vld [vmem:[%s2910_s0 + $0xe0] ss:$16 sps:$4 sm:$0xff]   ;;  %vm717_vm2 = vcmask 859136  }
   0x2   :  { %v2066_v5 = vsel %vm743_vm1, %v744_v2, 0  ;;  %758 = vmatprep.subr.bf16.mxu0 %v1702_v0  ;;  %v1705_v6 = vld [vmem:[%s2910_s0 + $0x2c4] ss:$16 sps:$4 sm:$0x1f]   ;;  %v1710_v11 = vld [vmem:[%s2910_s0 + $0xc0] ss:$16 sps:$4 sm:$0xff]  }
   0x3   :  { %v1707_v7 = vld [vmem:[%s2910_s0 + $0x2c0] ss:$16 sps:$4 sm:$0x1f]   ;;  %759 = vmatpush1.bf16.msra.mxu0 %v1704_v4  ;;  %v1708_v8 = vld [vmem:[%s2910_s0 + $0xc4] ss:$16 sps:$4 sm:$0xff]   ;;  %v750_v9 = vand.u32 %v1705_v6, %v2066_v5 }
   0x4   :  { %v747_v10 = vand.u32 %v1707_v7, %v2066_v5  ;;  %760 = vmatprep.subr.bf16.mxu0 %v1708_v8  ;;  %v1711_v12 = vld [vmem:[%s2910_s0 + $0x2a4] ss:$16 sps:$4 sm:$0xff]   ;;  %v1713_v13 = vld [vmem:[%s2910_s0 + $0x2a0] ss:$16 sps:$4 sm:$0xff]   ;;  %v1750_v36 = vld [vmem:[%s2910_s0 + $0xec] ss:$16 sps:$4 sm:$0xff]  }
   0x5   :  { %873 = vmatprep.subr.bf16.mxu1 %v750_v9  ;;  %v1714_v14 = vld [vmem:[%s2910_s0 + $0xa4] ss:$16 sps:$4 sm:$0xff]   ;;  %v1716_v15 = vld [vmem:[%s2910_s0 + $0xa0] ss:$16 sps:$4 sm:$0xff]   ;;  %v1748_v39 = vld [vmem:[%s2910_s0 + $0xe8] ss:$16 sps:$4 sm:$0xff]  }
   0x6   :  { %874 = vmatpush1.bf16.msra.mxu1 %v747_v10  ;;  %v1717_v16 = vld [vmem:[%s2910_s0 + $0x284] ss:$16 sps:$4 sm:$0xff]   ;;  %v1719_v18 = vld [vmem:[%s2910_s0 + $0x280] ss:$16 sps:$4 sm:$0xff]   ;;  %v1756_v41 = vld [vmem:[%s2910_s0 + $0xcc] ss:$16 sps:$4 sm:$0xff]  }
   0x7   :  { %761 = vmatpush1.bf16.msra.mxu0 %v1710_v11  ;;  %875 = vmatprep.subr.bf16.mxu1 %v1711_v12  ;;  %v1720_v17 = vld [vmem:[%s2910_s0 + $0x84] ss:$16 sps:$4 sm:$0xff]   ;;  %v1722_v19 = vld [vmem:[%s2910_s0 + $0x80] ss:$16 sps:$4 sm:$0xff]   ;;  %v1754_v43 = vld [vmem:[%s2910_s0 + $0xc8] ss:$16 sps:$4 sm:$0xff]  }
   0x8   :  { %762 = vmatprep.subr.bf16.mxu0 %v1714_v14  ;;  %v1723_v20 = vld [vmem:[%s2910_s0 + $0x264] ss:$16 sps:$4 sm:$0xff]   ;;  %v1725_v22 = vld [vmem:[%s2910_s0 + $0x260] ss:$16 sps:$4 sm:$0xff]   ;;  %v1763_v45 = vld [vmem:[%s2910_s0 + $0xac] ss:$16 sps:$4 sm:$0xff]  }
   0x9   :  { %v1726_v21 = vld [vmem:[%s2910_s0 + $0x64] ss:$16 sps:$4 sm:$0xff]   ;;  %v1728_v23 = vld [vmem:[%s2910_s0 + $0x60] ss:$16 sps:$4 sm:$0xff]   ;;  %v1761_v48 = vld [vmem:[%s2910_s0 + $0xa8] ss:$16 sps:$4 sm:$0xff]  }
   0xa   :  { %876 = vmatpush1.bf16.msra.mxu1 %v1713_v13  ;;  %v1729_v24 = vld [vmem:[%s2910_s0 + $0x244] ss:$16 sps:$4 sm:$0xff]   ;;  %v1731_v26 = vld [vmem:[%s2910_s0 + $0x240] ss:$16 sps:$4 sm:$0xff]   ;;  %v1769_v50 = vld [vmem:[%s2910_s0 + $0x8c] ss:$16 sps:$4 sm:$0xff]  }
   0xb   :  { %763 = vmatpush1.bf16.msra.mxu0 %v1716_v15  ;;  %877 = vmatprep.subr.bf16.mxu1 %v1717_v16  ;;  %v1732_v25 = vld [vmem:[%s2910_s0 + $0x44] ss:$16 sps:$4 sm:$0xff]   ;;  %v1734_v27 = vld [vmem:[%s2910_s0 + $0x40] ss:$16 sps:$4 sm:$0xff]   ;;  %v1767_v52 = vld [vmem:[%s2910_s0 + $0x88] ss:$16 sps:$4 sm:$0xff]  }
   0xc   :  { %764 = vmatprep.subr.bf16.mxu0 %v1720_v17  ;;  %v1735_v28 = vld [vmem:[%s2910_s0 + $0x224] ss:$16 sps:$4 sm:$0xff]   ;;  %v1737_v30 = vld [vmem:[%s2910_s0 + $0x220] ss:$16 sps:$4 sm:$0xff]   ;;  %v1776_v54 = vld [vmem:[%s2910_s0 + $0x6c] ss:$16 sps:$4 sm:$0xff]  }
   0xd   :  { %v1738_v29 = vld [vmem:[%s2910_s0 + $0x24] ss:$16 sps:$4 sm:$0xff]   ;;  %v1740_v31 = vld [vmem:[%s2910_s0 + $0x20] ss:$16 sps:$4 sm:$0xff]   ;;  %v1774_v57 = vld [vmem:[%s2910_s0 + $0x68] ss:$16 sps:$4 sm:$0xff]  }
   0xe   :  { %878 = vmatpush1.bf16.msra.mxu1 %v1719_v18  ;;  %v1741_v32 = vld [vmem:[%s2910_s0 + $0x204] ss:$16 sps:$4 sm:$0xff]   ;;  %v1743_v34 = vld [vmem:[%s2910_s0 + $0x200] ss:$16 sps:$4 sm:$0xff]   ;;  %v1782_v59 = vld [vmem:[%s2910_s0 + $0x4c] ss:$16 sps:$4 sm:$0xff]  }
   0xf   :  { %765 = vmatpush1.bf16.msra.mxu0 %v1722_v19  ;;  %879 = vmatprep.subr.bf16.mxu1 %v1723_v20  ;;  %v1744_v33 = vld [vmem:[%s2910_s0 + $0x4] ss:$16 sps:$4 sm:$0xff]   ;;  %v1746_v35 = vld [vmem:[%s2910_s0] ss:$16 sps:$4 sm:$0xff]   ;;  %v1780_v62 = vld [vmem:[%s2910_s0 + $0x48] ss:$16 sps:$4 sm:$0xff]  }
  0x10   :  { %766 = vmatprep.subr.bf16.mxu0 %v1726_v21  ;;  %v1751_v37 = vld [vmem:[%s2910_s0 + $0x1e4] ss:$16 sps:$4 sm:$0xff]   ;;  %v1753_v40 = vld [vmem:[%s2910_s0 + $0x1e0] ss:$16 sps:$4 sm:$0xff]   ;;  %v1789_v0 = vld [vmem:[%s2910_s0 + $0x2c] ss:$16 sps:$4 sm:$0xff]  }
  0x11   :  { %v2163_v38 = vld [vmem:[%s2911_s2 + $0x8] ss:$12 sps:$4 sm:$0xff]   ;;  %v1759_v44 = vld [vmem:[%s2910_s0 + $0x1c0] ss:$16 sps:$4 sm:$0xff]   ;;  %v2227_v56 = vld [vmem:[%s2911_s2 + $0x38] ss:$12 sps:$4 sm:$0xff]  }
  0x12   :  { %880 = vmatpush1.bf16.msra.mxu1 %v1725_v22  ;;  %v1757_v42 = vld [vmem:[%s2910_s0 + $0x1c4] ss:$16 sps:$4 sm:$0xff]   ;;  %v2195_v47 = vld [vmem:[%s2911_s2 + $0x20] ss:$12 sps:$4 sm:$0xff]   ;;  %v2264_v2 = vld [vmem:[%s2911_s2 + $0x50] ss:$12 sps:$4 sm:$0xff]  }
  0x13   :  { %767 = vmatpush1.bf16.msra.mxu0 %v1728_v23  ;;  %881 = vmatprep.subr.bf16.mxu1 %v1729_v24  ;;  %v1764_v46 = vld [vmem:[%s2910_s0 + $0x1a4] ss:$16 sps:$4 sm:$0xff]   ;;  %v1766_v49 = vld [vmem:[%s2910_s0 + $0x1a0] ss:$16 sps:$4 sm:$0xff]   ;;  %v1787_v4 = vld [vmem:[%s2910_s0 + $0x28] ss:$16 sps:$4 sm:$0xff]  }
  0x14   :  { %768 = vmatprep.subr.bf16.mxu0 %v1732_v25  ;;  %v1770_v51 = vld [vmem:[%s2910_s0 + $0x184] ss:$16 sps:$4 sm:$0xff]   ;;  %v1772_v53 = vld [vmem:[%s2910_s0 + $0x180] ss:$16 sps:$4 sm:$0xff]   ;;  %v1795_v7 = vld [vmem:[%s2910_s0 + $0xc] ss:$16 sps:$4 sm:$0xff]  }
  0x15   :  { %v1777_v55 = vld [vmem:[%s2910_s0 + $0x164] ss:$16 sps:$4 sm:$0xff]   ;;  %v1779_v58 = vld [vmem:[%s2910_s0 + $0x160] ss:$16 sps:$4 sm:$0xff]   ;;  %v1793_v10 = vld [vmem:[%s2910_s0 + $0x8] ss:$16 sps:$4 sm:$0xff]  }
  0x16   :  { %882 = vmatpush1.bf16.msra.mxu1 %v1731_v26  ;;  %v1783_v60 = vld [vmem:[%s2910_s0 + $0x144] ss:$16 sps:$4 sm:$0xff]   ;;  %v1785_v63 = vld [vmem:[%s2910_s0 + $0x140] ss:$16 sps:$4 sm:$0xff]   ;;  %v1802_v13 = vld [vmem:[%s2910_s0 + $0x1ec] ss:$16 sps:$4 sm:$0xff]  }
  0x17   :  { %769 = vmatpush1.bf16.msra.mxu0 %v1734_v27  ;;  %883 = vmatprep.subr.bf16.mxu1 %v1735_v28  ;;  %v2244_v61 = vld [vmem:[%s2911_s2 + $0x4] ss:$12 sps:$4 sm:$0xff]   ;;  %v1818_v9 = vld [vmem:[%s2910_s0 + $0x2cc] ss:$16 sps:$4 sm:$0x1f]  }
  0x18   :  { %770 = vmatprep.subr.bf16.mxu0 %v1738_v29  ;;  %v1790_v1 = vld [vmem:[%s2910_s0 + $0x124] ss:$16 sps:$4 sm:$0xff]   ;;  %790 = vmatprep.mubr.bf16.mxu0 %v2244_v61  ;;  %v1792_v6 = vld [vmem:[%s2910_s0 + $0x120] ss:$16 sps:$4 sm:$0xff]   ;;  %v2299_v14 = vand.u32 %v1818_v9, %v2066_v5  ;;  %v1800_v17 = vld [vmem:[%s2910_s0 + $0x1e8] ss:$16 sps:$4 sm:$0xff]  }
  0x19   :  { %v1796_v8 = vld [vmem:[%s2910_s0 + $0x104] ss:$16 sps:$4 sm:$0xff]   ;;  %v1798_v11 = vld [vmem:[%s2910_s0 + $0x100] ss:$16 sps:$4 sm:$0xff]   ;;  %v1808_v18 = vld [vmem:[%s2910_s0 + $0x1cc] ss:$16 sps:$4 sm:$0xff]  }
  0x1a   :  { %884 = vmatpush1.bf16.msra.mxu1 %v1737_v30  ;;  %v2293_v12 = vld [vmem:[%s2911_s2 + $0x68] ss:$12 sps:$4 sm:$0xff]   ;;  %v2308_v16 = vld [vmem:[%s2911_s2] ss:$12 sps:$4 sm:$0xff]   ;;  %v2355_v25 = vld [vmem:[%s2911_s2 + $0x18] ss:$12 sps:$4 sm:$0xff]  }
  0x1b   :  { %771 = vmatpush1.bf16.msra.mxu0 %v1740_v31  ;;  %885 = vmatprep.subr.bf16.mxu1 %v1741_v32  ;;  %v1816_v15 = vld [vmem:[%s2910_s0 + $0x2c8] ss:$16 sps:$4 sm:$0x1f]   ;;  %v2331_v21 = vld [vmem:[%s2910_s0 + $0x2ac] ss:$16 sps:$4 sm:$0xff]  }
  0x1c   :  { %772 = vmatprep.subr.bf16.mxu0 %v1744_v33  ;;  %v2319_v19 = vld [vmem:[%s2911_s2 + $0x1c] ss:$12 sps:$4 sm:$0xff]   ;;  %v2323_v20 = vand.u32 %v1816_v15, %v2066_v5  ;;  %v2344_v23 = vld [vmem:[%s2911_s2 + $0x80] ss:$12 sps:$4 sm:$0xff]  }
  0x1d   :  { %v1806_v22 = vld [vmem:[%s2910_s0 + $0x1c8] ss:$16 sps:$4 sm:$0xff]   ;;  %v1812_v5 = vld [vmem:[%s2910_s0 + $0x1ac] ss:$16 sps:$4 sm:$0xff]   ;;  %v2367_v28 = vld [vmem:[%s2911_s2 + $0x34] ss:$12 sps:$4 sm:$0xff]  }
  0x1e   :  { %886 = vmatpush1.bf16.msra.mxu1 %v1743_v34  ;;  %v2350_v24 = vld [vmem:[%s2910_s0 + $0x2a8] ss:$16 sps:$4 sm:$0xff]   ;;  %v1821_v27 = vld [vmem:[%s2910_s0 + $0x18c] ss:$16 sps:$4 sm:$0xff]  }
  0x1f   :  { %773 = vmatpush1.bf16.msra.mxu0 %v1746_v35  ;;  %984 = vmatprep.subr.bf16.mxu1 %v1750_v36  ;;  %v1810_v26 = vld [vmem:[%s2910_s0 + $0x1a8] ss:$16 sps:$4 sm:$0xff]   ;;  %v2376_v30 = vld [vmem:[%s2910_s0 + $0x28c] ss:$16 sps:$4 sm:$0xff]  }
  0x20   :  { %774 = vmatprep.subr.bf16.mxu0 %v1751_v37  ;;  %v1819_v29 = vld [vmem:[%s2910_s0 + $0x188] ss:$16 sps:$4 sm:$0xff]   ;;  %v2390_v32 = vld [vmem:[%s2910_s0 + $0x26c] ss:$16 sps:$4 sm:$0xff]  }
  0x21   :  { %1670 = vmatmul.mubr.msk.bf16.vlgmr.msra.gmra.mxu1 %vm717_vm2, %v2163_v38  ;;  %v2384_v31 = vld [vmem:[%s2910_s0 + $0x288] ss:$16 sps:$4 sm:$0xff]   ;;  %v1825_v33 = vld [vmem:[%s2910_s0 + $0x16c] ss:$16 sps:$4 sm:$0xff]  }
  0x22   :  { %985 = vmatpush1.bf16.msra.mxu1 %v1748_v39  ;;  %913 = vmatprep.mubr.bf16.mxu1 %v2033_v3  ;;  %v2399_v34 = vld [vmem:[%s2911_s2 + $0x98] ss:$12 sps:$4 sm:$0xff]   ;;  %v2405_v35 = vld [vmem:[%s2911_s2 + $0x30] ss:$12 sps:$4 sm:$0xff]  }
  0x23   :  { %775 = vmatpush2.bf16.msra.mxu0 %v1753_v40  ;;  %986 = vmatprep.subr.bf16.mxu1 %v1756_v41  ;;  %v1823_v36 = vld [vmem:[%s2910_s0 + $0x168] ss:$16 sps:$4 sm:$0xff]   ;;  %v1831_v37 = vld [vmem:[%s2910_s0 + $0x14c] ss:$16 sps:$4 sm:$0xff]  }
  0x24   :  { %776 = vmatprep.subr.bf16.mxu0 %v1757_v42  ;;  %v1839_v39 = vld [vmem:[%s2911_s2 + $0x4c] ss:$12 sps:$4 sm:$0xff]  }
  0x25   :  { %v1851_v40 = vld [vmem:[%s2910_s0 + $0x268] ss:$16 sps:$4 sm:$0xff]   ;;  %v1859_v41 = vld [vmem:[%s2910_s0 + $0x24c] ss:$16 sps:$4 sm:$0xff]  }
  0x26   :  { %987 = vmatpush1.bf16.msra.mxu1 %v1754_v43  ;;  %v1829_v42 = vld [vmem:[%s2910_s0 + $0x148] ss:$16 sps:$4 sm:$0xff]   ;;  %v1838_v43 = vld [vmem:[%s2910_s0 + $0x12c] ss:$16 sps:$4 sm:$0xff]  }
  0x27   :  { %777 = vmatpush2.bf16.msra.mxu0 %v1759_v44  ;;  %988 = vmatprep.subr.bf16.mxu1 %v1763_v45  ;;  %v1857_v44 = vld [vmem:[%s2910_s0 + $0x248] ss:$16 sps:$4 sm:$0xff]   ;;  %v2440_v45 = vld [vmem:[%s2911_s2 + $0xb0] ss:$12 sps:$4 sm:$0xff]  }
  0x28   :  { %778 = vmatprep.subr.bf16.mxu0 %v1764_v46  ;;  %v1841_v46 = vld [vmem:[%s2911_s2 + $0x48] ss:$12 sps:$4 sm:$0xff]  }
  0x29   :  { %1671 = vmatmul.mubr.msk.bf16.gmra.mxu1 %vm717_vm2, %v2195_v47 }
  0x2a   :  { %989 = vmatpush1.bf16.msra.mxu1 %v1761_v48  ;;  %923 = vmatprep.mubr.bf16.mxu1 %v2033_v3  ;;  %v1836_v48 = vld [vmem:[%s2910_s0 + $0x128] ss:$16 sps:$4 sm:$0xff]  }
  0x2b   :  { %779 = vmatpush2.bf16.msra.mxu0 %v1766_v49  ;;  %990 = vmatprep.subr.bf16.mxu1 %v1769_v50  ;;  %v1844_v49 = vld [vmem:[%s2910_s0 + $0x10c] ss:$16 sps:$4 sm:$0xff]   ;;  %v1848_v50 = vld [vmem:[%s2911_s2 + $0x64] ss:$12 sps:$4 sm:$0xff]  }
  0x2c   :  { %780 = vmatprep.subr.bf16.mxu0 %v1770_v51  ;;  %v1865_v51 = vld [vmem:[%s2910_s0 + $0x22c] ss:$16 sps:$4 sm:$0xff]  }
  0x2e   :  { %991 = vmatpush1.bf16.msra.mxu1 %v1767_v52  ;;  %v1863_v52 = vld [vmem:[%s2910_s0 + $0x228] ss:$16 sps:$4 sm:$0xff]  }
  0x2f   :  { %781 = vmatpush2.bf16.msra.mxu0 %v1772_v53  ;;  %992 = vmatprep.subr.bf16.mxu1 %v1776_v54  ;;  %v1842_v53 = vld [vmem:[%s2910_s0 + $0x108] ss:$16 sps:$4 sm:$0xff]   ;;  %v1871_v54 = vld [vmem:[%s2910_s0 + $0x20c] ss:$16 sps:$4 sm:$0xff]  }
  0x30   :  { %782 = vmatprep.subr.bf16.mxu0 %v1777_v55  ;;  %v1850_v55 = vld [vmem:[%s2911_s2 + $0x60] ss:$12 sps:$4 sm:$0xff]  }
  0x31   :  { %1672 = vmatmul.mubr.msk.bf16.gmra.mxu1 %vm717_vm2, %v2227_v56 }
  0x32   :  { %993 = vmatpush1.bf16.msra.mxu1 %v1774_v57  ;;  %933 = vmatprep.mubr.bf16.mxu1 %v2033_v3  ;;  %v1854_v57 = vld [vmem:[%s2911_s2 + $0x7c] ss:$12 sps:$4 sm:$0xff]  }
  0x33   :  { %783 = vmatpush2.bf16.msra.mxu0 %v1779_v58  ;;  %994 = vmatprep.subr.bf16.mxu1 %v1782_v59  ;;  %v1869_v58 = vld [vmem:[%s2910_s0 + $0x208] ss:$16 sps:$4 sm:$0xff]  }
  0x34   :  { %784 = vmatprep.subr.bf16.mxu0 %v1783_v60  ;;  %v1856_v59 = vld [vmem:[%s2911_s2 + $0x78] ss:$12 sps:$4 sm:$0xff]   ;;  %v1860_v60 = vld [vmem:[%s2911_s2 + $0x94] ss:$12 sps:$4 sm:$0xff]  }
  0x36   :  { %995 = vmatpush1.bf16.msra.mxu1 %v1780_v62  ;;  %v1866_v62 = vld [vmem:[%s2911_s2 + $0xac] ss:$12 sps:$4 sm:$0xff]  }
  0x37   :  { %785 = vmatpush2.bf16.msra.mxu0 %v1785_v63  ;;  %996 = vmatprep.subr.bf16.mxu1 %v1789_v0  ;;  %v1868_v63 = vld [vmem:[%s2911_s2 + $0xa8] ss:$12 sps:$4 sm:$0xff]  }
  0x38   :  { %786 = vmatprep.subr.bf16.mxu0 %v1790_v1 }
  0x39   :  { %1673 = vmatmul.mubr.msk.bf16.gmra.mxu1 %vm717_vm2, %v2264_v2 }
  0x3a   :  { %997 = vmatpush1.bf16.msra.mxu1 %v1787_v4  ;;  %943 = vmatprep.mubr.bf16.mxu1 %v2033_v3 }
  0x3b   :  { %787 = vmatpush2.bf16.msra.mxu0 %v1792_v6  ;;  %998 = vmatprep.subr.bf16.mxu1 %v1795_v7 }
  0x3c   :  { %788 = vmatprep.subr.bf16.mxu0 %v1796_v8 }
  0x3e   :  { %999 = vmatpush1.bf16.msra.mxu1 %v1793_v10 }
  0x3f   :  { %789 = vmatpush2.bf16.msra.mxu0 %v1798_v11  ;;  %1000 = vmatprep.subr.bf16.mxu1 %v1802_v13 }
  0x40   :  { %1099 = vmatprep.subr.bf16.mxu0 %v2299_v14 }
  0x41   :  { %1674 = vmatmul.mubr.msk.bf16.gmra.mxu1 %vm717_vm2, %v2293_v12 }
  0x42   :  { %791 = vmatmul.mubr.bf16.vlgmr.msra.gmra.mxu0 %v2308_v16  ;;  %1001 = vmatpush2.bf16.msra.mxu1 %v1800_v17 }
  0x43   :  { %953 = vmatprep.mubr.bf16.mxu1 %v2033_v3  ;;  %1002 = vmatprep.subr.bf16.mxu1 %v1808_v18 }
  0x44   :  { %800 = vmatprep.mubr.bf16.mxu0 %v2319_v19  ;;  %1100 = vmatpush1.bf16.msra.mxu0 %v2323_v20 }
  0x45   :  { %1101 = vmatprep.subr.bf16.mxu0 %v2331_v21 }
  0x46   :  { %1003 = vmatpush2.bf16.msra.mxu1 %v1806_v22 }
  0x47   :  { %1004 = vmatprep.subr.bf16.mxu1 %v1812_v5 }
  0x48   :  { %1102 = vmatpush1.bf16.msra.mxu0 %v2350_v24 }
  0x49   :  { %1675 = vmatmul.mubr.msk.bf16.gmra.mxu1 %vm717_vm2, %v2344_v23  ;;  %1103 = vmatprep.subr.bf16.mxu0 %v2376_v30 }
  0x4a   :  { %801 = vmatmul.mubr.bf16.gmra.mxu0 %v2355_v25  ;;  %1005 = vmatpush2.bf16.msra.mxu1 %v1810_v26 }
  0x4b   :  { %963 = vmatprep.mubr.bf16.mxu1 %v2033_v3  ;;  %1006 = vmatprep.subr.bf16.mxu1 %v1821_v27 }
  0x4c   :  { %810 = vmatprep.mubr.bf16.mxu0 %v2367_v28  ;;  %1104 = vmatpush1.bf16.msra.mxu0 %v2384_v31 }
  0x4d   :  { %1105 = vmatprep.subr.bf16.mxu0 %v2390_v32 }
  0x4e   :  { %1007 = vmatpush2.bf16.msra.mxu1 %v1819_v29 }
  0x4f   :  { %1008 = vmatprep.subr.bf16.mxu1 %v1825_v33 }
  0x50   :  { %1106 = vmatpush1.bf16.msra.mxu0 %v1851_v40 }
  0x51   :  { %1676 = vmatmul.mubr.msk.bf16.gmra.mxu1 %vm717_vm2, %v2399_v34  ;;  %1107 = vmatprep.subr.bf16.mxu0 %v1859_v41 }
  0x52   :  { %811 = vmatmul.mubr.bf16.gmra.mxu0 %v2405_v35  ;;  %1009 = vmatpush2.bf16.msra.mxu1 %v1823_v36 }
  0x53   :  { %973 = vmatprep.mubr.bf16.mxu1 %v2033_v3  ;;  %1010 = vmatprep.subr.bf16.mxu1 %v1831_v37 }
  0x54   :  { %820 = vmatprep.mubr.bf16.mxu0 %v1839_v39  ;;  %1108 = vmatpush1.bf16.msra.mxu0 %v1857_v44 }
  0x55   :  { %1109 = vmatprep.subr.bf16.mxu0 %v1865_v51 }
  0x56   :  { %1011 = vmatpush2.bf16.msra.mxu1 %v1829_v42 }
  0x57   :  { %1012 = vmatprep.subr.bf16.mxu1 %v1838_v43 }
  0x58   :  { %1110 = vmatpush1.bf16.msra.mxu0 %v1863_v52 }
  0x59   :  { %1677 = vmatmul.mubr.msk.bf16.gmra.mxu1 %vm717_vm2, %v2440_v45  ;;  %1111 = vmatprep.subr.bf16.mxu0 %v1871_v54 }
  0x5a   :  { %821 = vmatmul.mubr.bf16.gmra.mxu0 %v1841_v46  ;;  %1013 = vmatpush2.bf16.msra.mxu1 %v1836_v48 }
  0x5b   :  { %1016 = vmatprep.mubr.bf16.mxu1 %v2244_v61  ;;  %1014 = vmatprep.subr.bf16.mxu1 %v1844_v49  ;;  %v1862_v61 = vld [vmem:[%s2911_s2 + $0x90] ss:$12 sps:$4 sm:$0xff]  }
  0x5c   :  { %830 = vmatprep.mubr.bf16.mxu0 %v1848_v50  ;;  %1112 = vmatpush1.bf16.msra.mxu0 %v1869_v58 }
  0x5e   :  { %1015 = vmatpush2.bf16.msra.mxu1 %v1842_v53 }
  0x5f   :  { %1686 = vmatprep.subr.bf16.mxu1 %v2299_v14 }
  0x61   :  { %1017 = vmatmul.mubr.bf16.vlgmr.msra.gmra.mxu1 %v2308_v16 }
  0x62   :  { %831 = vmatmul.mubr.bf16.gmra.mxu0 %v1850_v55  ;;  %1693 = vmatpush1.bf16.msra.mxu1 %v2323_v20 }
  0x63   :  { %1026 = vmatprep.mubr.bf16.mxu1 %v2319_v19  ;;  %840 = vmatprep.mubr.bf16.mxu0 %v1854_v57 }
  0x64   :  { %1687 = vmatprep.subr.bf16.mxu1 %v2331_v21 }
  0x66   :  { %1694 = vmatpush1.bf16.msra.mxu1 %v2350_v24 }
  0x67   :  { %1688 = vmatprep.subr.bf16.mxu1 %v2376_v30 }
  0x69   :  { %1027 = vmatmul.mubr.bf16.gmra.mxu1 %v2355_v25 }
  0x6a   :  { %841 = vmatmul.mubr.bf16.gmra.mxu0 %v1856_v59  ;;  %1036 = vmatprep.mubr.bf16.mxu1 %v2367_v28 }
  0x6b   :  { %850 = vmatprep.mubr.bf16.mxu0 %v1860_v60  ;;  %1695 = vmatpush1.bf16.msra.mxu1 %v2384_v31 }
  0x6c   :  { %1689 = vmatprep.subr.bf16.mxu1 %v2390_v32 }
  0x6f   :  { %1696 = vmatpush1.bf16.msra.mxu1 %v1851_v40 }
  0x70   :  { %1690 = vmatprep.subr.bf16.mxu1 %v1859_v41 }
  0x71   :  { %1037 = vmatmul.mubr.bf16.gmra.mxu1 %v2405_v35 }
  0x72   :  { %851 = vmatmul.mubr.bf16.gmra.mxu0 %v1862_v61  ;;  %1046 = vmatprep.mubr.bf16.mxu1 %v1839_v39 }
  0x73   :  { %860 = vmatprep.mubr.bf16.mxu0 %v1866_v62  ;;  %1697 = vmatpush1.bf16.msra.mxu1 %v1857_v44 }
  0x74   :  { %1691 = vmatprep.subr.bf16.mxu1 %v1865_v51 }
  0x77   :  { %1698 = vmatpush1.bf16.msra.mxu1 %v1863_v52 }
  0x78   :  { %1692 = vmatprep.subr.bf16.mxu1 %v1871_v54 }
  0x79   :  { %1047 = vmatmul.mubr.bf16.gmra.mxu1 %v1841_v46 }
  0x7a   :  { %861 = vmatmul.mubr.bf16.gmra.mxu0 %v1868_v63  ;;  %1056 = vmatprep.mubr.bf16.mxu1 %v1848_v50 }
  0x7b   :  { %1129 = vmatprep.mubr.bf16.mxu0 %v2033_v3  ;;  %1699 = vmatpush1.bf16.msra.mxu1 %v1869_v58 }
  0x81   :  { %1057 = vmatmul.mubr.bf16.gmra.mxu1 %v1850_v55 }
  0x82   :  { %1678 = vmatmul.mubr.msk.bf16.vlgmr.msra.gmra.mxu0 %vm717_vm2, %v2163_v38  ;;  %1066 = vmatprep.mubr.bf16.mxu1 %v1854_v57 }
  0x83   :  { %1139 = vmatprep.mubr.bf16.mxu0 %v2033_v3 }
  0x89   :  { %1067 = vmatmul.mubr.bf16.gmra.mxu1 %v1856_v59 }
  0x8a   :  { %1679 = vmatmul.mubr.msk.bf16.gmra.mxu0 %vm717_vm2, %v2195_v47  ;;  %1076 = vmatprep.mubr.bf16.mxu1 %v1860_v60 }
  0x8b   :  { %1149 = vmatprep.mubr.bf16.mxu0 %v2033_v3 }
  0x91   :  { %1077 = vmatmul.mubr.bf16.gmra.mxu1 %v1862_v61 }
  0x92   :  { %1680 = vmatmul.mubr.msk.bf16.gmra.mxu0 %vm717_vm2, %v2227_v56  ;;  %1086 = vmatprep.mubr.bf16.mxu1 %v1866_v62 }
  0x93   :  { %1159 = vmatprep.mubr.bf16.mxu0 %v2033_v3 }
  0x99   :  { %1087 = vmatmul.mubr.bf16.gmra.mxu1 %v1868_v63 }
  0x9a   :  { %1681 = vmatmul.mubr.msk.bf16.gmra.mxu0 %vm717_vm2, %v2264_v2  ;;  %1189 = vmatprep.mubr.bf16.mxu1 %v2033_v3 }
  0x9b   :  { %1169 = vmatprep.mubr.bf16.mxu0 %v2033_v3 }
  0xa1   :  { %1684 = vmatmul.mubr.msk.bf16.vlgmr.msra.gmra.mxu1 %vm717_vm2, %v2399_v34 }
  0xa2   :  { %1682 = vmatmul.mubr.msk.bf16.gmra.mxu0 %vm717_vm2, %v2293_v12  ;;  %1199 = vmatprep.mubr.bf16.mxu1 %v2033_v3 }
  0xa3   :  { %1179 = vmatprep.mubr.bf16.mxu0 %v2033_v3 }
  0xa9   :  { %1685 = vmatmul.mubr.msk.bf16.gmra.mxu1 %vm717_vm2, %v2440_v45 }
  0xaa   :  { %1683 = vmatmul.mubr.msk.bf16.gmra.mxu0 %vm717_vm2, %v2344_v23 }
  0xe1   :  { %v905_v38 = vpop.f32.mrf.mxu1 }
  0xe3   :  { %v907_v47 = vpop.f32.mrf.mxu1 }
  0xe5   :  { %v909_v56 = vpop.f32.mrf.mxu1 }
  0xe7   :  { %v911_v0 = vpop.f32.mrf.mxu1 }
  0xe9   :  { %v915_v1 = vpop.f32.mrf.mxu1 }
  0xeb   :  { %v2529_v2 = vpop.f32.mrf.mxu1 }
  0xed   :  { %v2531_v4 = vpop.f32.mrf.mxu1 }
  0xef   :  { %v2533_v6 = vpop.f32.mrf.mxu1 }
  0xf1   :  { %v925_v7 = vpop.f32.mrf.mxu1 }
  0xf3   :  { %v927_v8 = vpop.f32.mrf.mxu1 }
  0xf5   :  { %v929_v3 = vpop.f32.mrf.mxu1 }
  0xf7   :  { %v931_v9 = vpop.f32.mrf.mxu1 }
  0xf9   :  { %v2535_v10 = vpop.f32.mrf.mxu1 }
  0xfb   :  { %v2537_v11 = vpop.f32.mrf.mxu1 }
  0xfd   :  { %v2539_v12 = vpop.f32.mrf.mxu1 }
  0xff   :  { %v2541_v13 = vpop.f32.mrf.mxu1 }
 0x101   :  { %v2543_v14 = vpop.f32.mrf.mxu1 }
 0x102   :  { %v792_v15 = vpop.f32.mrf.mxu0 }
 0x103   :  { %v2545_v16 = vpop.f32.mrf.mxu1  ;;  %v906_v42 = vadd.f32 %v905_v38, %v792_v15 }
 0x104   :  { %v794_v17 = vpop.f32.mrf.mxu0 }
 0x105   :  { %v2547_v18 = vpop.f32.mrf.mxu1  ;;  %v908_v43 = vadd.f32 %v907_v47, %v794_v17  ;;  %v1210_v51 = vmul.f32 0.5, %v906_v42 }
 0x106   :  { %v796_v19 = vpop.f32.mrf.mxu0 }
 0x107   :  { %v2549_v20 = vpop.f32.mrf.mxu1  ;;  %v910_v46 = vadd.f32 %v909_v56, %v796_v19  ;;  %v1211_v52 = vmul.f32 0.5, %v908_v43  ;;  %1872 = vtanh.f32 %v1210_v51 }
 0x108   :  { %v798_v21 = vpop.f32.mrf.mxu0 }
 0x109   :  { %v2551_v22 = vpop.f32.mrf.mxu1  ;;  %v912_v48 = vadd.f32 %v911_v0, %v798_v21  ;;  %v1214_v57 = vmul.f32 0.5, %v910_v46  ;;  %1874 = vtanh.f32 %v1211_v52 }
 0x10a   :  { %v802_v5 = vpop.f32.mrf.mxu0 }
 0x10b   :  { %v2553_v23 = vpop.f32.mrf.mxu1  ;;  %v916_v53 = vadd.f32 %v915_v1, %v802_v5  ;;  %v1215_v59 = vmul.f32 0.5, %v912_v48  ;;  %1876 = vtanh.f32 %v1214_v57 }
 0x10c   :  { %v804_v24 = vpop.f32.mrf.mxu0 }
 0x10d   :  { %v2555_v25 = vpop.f32.mrf.mxu1  ;;  %v1218_v63 = vmul.f32 0.5, %v916_v53  ;;  %v918_v0 = vadd.f32 %v2529_v2, %v804_v24  ;;  %1878 = vtanh.f32 %v1215_v59 }
 0x10e   :  { %v806_v26 = vpop.f32.mrf.mxu0 }
 0x10f   :  { %v2557_v27 = vpop.f32.mrf.mxu1  ;;  %v920_v19 = vadd.f32 %v2531_v4, %v806_v26  ;;  %1880 = vtanh.f32 %v1218_v63 }
 0x110   :  { %v808_v28 = vpop.f32.mrf.mxu0 }
 0x111   :  { %v2559_v29 = vpop.f32.mrf.mxu1  ;;  %v1222_v4 = vmul.f32 0.5, %v920_v19 }
 0x112   :  { %v812_v30 = vpop.f32.mrf.mxu0 }
 0x113   :  { %v2561_v31 = vpop.f32.mrf.mxu1  ;;  %v926_v58 = vadd.f32 %v925_v7, %v812_v30 }
 0x114   :  { %v814_v32 = vpop.f32.mrf.mxu0  ;;  %v1873_v48 = vpop.eup %1872 }
 0x115   :  { %v2563_v33 = vpop.f32.mrf.mxu1  ;;  %v928_v62 = vadd.f32 %v927_v8, %v814_v32  ;;  %v1226_v1 = vmul.f32 0.5, %v926_v58  ;;  %v1219_v32 = vmul.f32 0.5, %v918_v0 }
 0x116   :  { %v816_v34 = vpop.f32.mrf.mxu0  ;;  %v1875_v51 = vpop.eup %1874 }
 0x117   :  { %v2565_v35 = vpop.f32.mrf.mxu1  ;;  %v930_v38 = vadd.f32 %v929_v3, %v816_v34  ;;  %v1227_v8 = vmul.f32 0.5, %v928_v62  ;;  %v922_v3 = vadd.f32 %v2533_v6, %v808_v28  ;;  %1882 = vtanh.f32 %v1226_v1 }
 0x118   :  { %v818_v36 = vpop.f32.mrf.mxu0  ;;  %v1877_v53 = vpop.eup %1876  ;;  %v1306_v62 = vmul.f32 0.5, %v1873_v48 }
 0x119   :  { %v2567_v37 = vpop.f32.mrf.mxu1  ;;  %v932_v7 = vadd.f32 %v931_v9, %v818_v36  ;;  %v1230_v21 = vmul.f32 0.5, %v930_v38  ;;  %1884 = vtanh.f32 %v1227_v8  ;;  %v1223_v26 = vmul.f32 0.5, %v922_v3 }
 0x11a   :  { %v822_v39 = vpop.f32.mrf.mxu0  ;;  %v1310_v8 = vmul.f32 0.5, %v1877_v53 }
 0x11b   :  { %v2569_v40 = vpop.f32.mrf.mxu1  ;;  %v936_v2 = vadd.f32 %v2535_v10, %v822_v39  ;;  %v1231_v9 = vmul.f32 0.5, %v932_v7  ;;  %1886 = vtanh.f32 %v1230_v21 }
 0x11c   :  { %v824_v41 = vpop.f32.mrf.mxu0  ;;  %1888 = vtanh.f32 %v1219_v32 }
 0x11d   :  { %v2571_v44 = vpop.f32.mrf.mxu1  ;;  %v938_v24 = vadd.f32 %v2537_v11, %v824_v41  ;;  %v1234_v43 = vmul.f32 0.5, %v936_v2  ;;  %1890 = vtanh.f32 %v1231_v9  ;;  %v2630_v2 = vadd.f32 0.5, %v1306_v62 }
 0x11e   :  { %v826_v45 = vpop.f32.mrf.mxu0  ;;  %1892 = vtanh.f32 %v1222_v4 }
 0x11f   :  { %v2573_v49 = vpop.f32.mrf.mxu1  ;;  %v940_v6 = vadd.f32 %v2539_v12, %v826_v45  ;;  %v1235_v10 = vmul.f32 0.5, %v938_v24  ;;  %1894 = vtanh.f32 %v1223_v26 }
 0x120   :  { %v828_v50 = vpop.f32.mrf.mxu0  ;;  %1896 = vtanh.f32 %v1234_v43 }
 0x121   :  { %v2575_v54 = vpop.f32.mrf.mxu1  ;;  %v942_v11 = vadd.f32 %v2541_v13, %v828_v50  ;;  %v1238_v46 = vmul.f32 0.5, %v940_v6  ;;  %1898 = vtanh.f32 %v1235_v10  ;;  %v1879_v50 = vpop.eup %1878 }
 0x122   :  { %v2577_v55 = vpop.f32.mrf.mxu0  ;;  %v1881_v1 = vpop.eup %1880  ;;  %v1311_v3 = vmul.f32 0.5, %v1879_v50 }
 0x123   :  { %v2579_v60 = vpop.f32.mrf.mxu1  ;;  %v1239_v57 = vmul.f32 0.5, %v942_v11  ;;  %1900 = vtanh.f32 %v1238_v46  ;;  %v946_v63 = vadd.f32 %v2543_v14, %v2577_v55  ;;  %v1314_v9 = vmul.f32 0.5, %v1881_v1 }
 0x124   :  { %v2581_v61 = vpop.f32.mrf.mxu0  ;;  %v1883_v19 = vpop.eup %1882  ;;  %v2641_v11 = vadd.f32 0.5, %v1311_v3 }
 0x125   :  { %v2583_v47 = vpop.f32.mrf.mxu1  ;;  %v1242_v24 = vmul.f32 0.5, %v946_v63 }
 0x126   :  { %v2585_v56 = vpop.f32.mrf.mxu0  ;;  %v1885_v55 = vpop.eup %1884 }
 0x127   :  { %v2588_v15 = vpop.f32.mrf.mxu1 }
 0x128   :  { %v2590_v17 = vpop.f32.mrf.mxu0  ;;  %v1887_v26 = vpop.eup %1886 }
 0x129   :  { %v2594_v5 = vpop.f32.mrf.mxu1  ;;  %v1889_v10 = vpop.eup %1888  ;;  %v952_v48 = vadd.f32 %v2549_v20, %v2590_v17 }
 0x12a   :  { %v2596_v30 = vpop.f32.mrf.mxu0 }
 0x12b   :  { %v2600_v34 = vpop.f32.mrf.mxu1 }
 0x12c   :  { %v2602_v36 = vpop.f32.mrf.mxu0 }
 0x12d   :  { %v2605_v28 = vpop.f32.mrf.mxu1  ;;  %v958_v63 = vadd.f32 %v2553_v23, %v2602_v36 }
 0x12e   :  { %v2607_v42 = vpop.f32.mrf.mxu0 }
 0x12f   :  { %v2610_v39 = vpop.f32.mrf.mxu1 }
 0x130   :  { %v2612_v41 = vpop.f32.mrf.mxu0 }
 0x131   :  { %v2614_v12 = vpop.f32.mrf.mxu1 }
 0x132   :  { %v852_v45 = vpop.f32.mrf.mxu0 }
 0x133   :  { %v966_v52 = vadd.f32 %v2559_v29, %v852_v45  ;;  %v2617_v58 = vpop.f32.mrf.mxu1  ;;  %v1307_v29 = vmul.f32 0.5, %v1875_v51  ;;  %v1891_v45 = vpop.eup %1890  ;;  %v1323_v51 = vmul.f32 0.5, %v1885_v55  ;;  %v960_v55 = vadd.f32 %v2555_v25, %v2607_v42 }
 0x134   :  { %v854_v13 = vpop.f32.mrf.mxu0  ;;  %v1893_v53 = vpop.eup %1892  ;;  %v1327_v1 = vmul.f32 0.5, %v1891_v45 }
 0x135   :  { %v968_v59 = vadd.f32 %v2561_v31, %v854_v13  ;;  %1902 = vtanh.f32 %v966_v52  ;;  %v2622_v38 = vpop.f32.mrf.mxu1  ;;  %v948_v31 = vadd.f32 %v2545_v16, %v2581_v61  ;;  %v2636_v43 = vadd.f32 0.5, %v1307_v29  ;;  %v2654_v17 = vpop.eup %1894 }
 0x136   :  { %v856_v0 = vpop.f32.mrf.mxu0  ;;  %v1322_v16 = vmul.f32 0.5, %v1883_v19  ;;  %v956_v52 = vadd.f32 %v2551_v22, %v2596_v30  ;;  %v1326_v13 = vmul.f32 0.5, %v1887_v26  ;;  %v1897_v30 = vpop.eup %1896  ;;  %v1247_v29 = vmul.f32 0.5, %v952_v48 }
 0x137   :  { %1904 = vtanh.f32 %v968_v59  ;;  %v970_v7 = vadd.f32 %v2563_v33, %v856_v0  ;;  %v2627_v21 = vpop.f32.mrf.mxu1  ;;  %v950_v33 = vadd.f32 %v2547_v18, %v2585_v56  ;;  %v1243_v46 = vmul.f32 0.5, %v948_v31  ;;  %v1418_v0 = vld [vmem:[%s2912_s1] sm:$0xff] }
 0x138   :  { %1906 = vtanh.f32 %v1239_v57  ;;  %v858_v32 = vpop.f32.mrf.mxu0  ;;  %v2650_v57 = vadd.f32 0.5, %v1314_v9  ;;  %v1370_v62 = vadd.f32 0.5, %v1322_v16  ;;  %v1371_v3 = vadd.f32 0.5, %v1323_v51  ;;  %v1423_v51 = vld [vmem:[%s2912_s1 + $0x28] sm:$0xff] }
 0x139   :  { %1908 = vtanh.f32 %v970_v7  ;;  %v972_v14 = vadd.f32 %v2565_v35, %v858_v32  ;;  %v2634_v4 = vpop.f32.mrf.mxu1  ;;  %v2639_v35 = vadd.f32 0.5, %v1310_v8  ;;  %v1246_v50 = vmul.f32 0.5, %v950_v33  ;;  %v1899_v8 = vpop.eup %1898  ;;  %v1419_v32 = vld [vmem:[%s2912_s1 + $0x8] sm:$0xff] }
 0x13a   :  { %v862_v6 = vpop.f32.mrf.mxu0  ;;  %v1250_v31 = vmul.f32 0.5, %v956_v52  ;;  %v2667_v36 = vmul.f32 0.5, %v1893_v53  ;;  %v1330_v26 = vmul.f32 0.5, %v1897_v30  ;;  %v1251_v16 = vmul.f32 0.5, %v958_v63 }
 0x13b   :  { %1910 = vtanh.f32 %v972_v14  ;;  %v976_v61 = vadd.f32 %v2567_v37, %v862_v6  ;;  %v2645_v18 = vpop.f32.mrf.mxu1  ;;  %v1374_v14 = vadd.f32 0.5, %v1326_v13  ;;  %v1434_v6 = vmul.f32 %v1418_v0, %v1370_v62 }
 0x13c   :  { %v864_v56 = vpop.f32.mrf.mxu0  ;;  %v1435_v45 = vmul.f32 %v1419_v32, %v1371_v3  ;;  %v1331_v52 = vmul.f32 0.5, %v1899_v8  ;;  %v1378_v62 = vadd.f32 0.5, %v1330_v26  ;;  %v1319_v32 = vmul.f32 0.5, %v2654_v17 }
 0x13d   :  { %1912 = vtanh.f32 %v976_v61  ;;  %v978_v37 = vadd.f32 %v2569_v40, %v864_v56  ;;  %v2652_v59 = vpop.f32.mrf.mxu1  ;;  %v2659_v40 = vmul.f32 0.5, %v1889_v10  ;;  %v1375_v10 = vadd.f32 0.5, %v1327_v1 }
 0x13e   :  { %1914 = vtanh.f32 %v1242_v24  ;;  %v866_v20 = vpop.f32.mrf.mxu0  ;;  %v1379_v3 = vadd.f32 0.5, %v1331_v52 }
 0x13f   :  { %1916 = vtanh.f32 %v978_v37  ;;  %v980_v22 = vadd.f32 %v2571_v44, %v866_v20  ;;  %v2664_v7 = vpop.f32.mrf.mxu1  ;;  %v1901_v44 = vpop.eup %1900  ;;  %v1439_v0 = vmul.f32 %v1423_v51, %v1375_v10  ;;  %v1431_v51 = vld [vmem:[%s2912_s1 + $0x68] sm:$0xff] }
 0x140   :  { %1918 = vtanh.f32 %v1243_v46  ;;  %v868_v19 = vpop.f32.mrf.mxu0  ;;  %v962_v46 = vadd.f32 %v2557_v27, %v2612_v41  ;;  %v1254_v27 = vmul.f32 0.5, %v960_v55 }
 0x141   :  { %1920 = vtanh.f32 %v980_v22  ;;  %v982_v23 = vadd.f32 %v2573_v49, %v868_v19  ;;  %v2674_v9 = vpop.f32.mrf.mxu1  ;;  %v1422_v49 = vld [vmem:[%s2912_s1 + $0x20] sm:$0xff] }
 0x142   :  { %1922 = vtanh.f32 %v1246_v50  ;;  %v2676_v24 = vpop.f32.mrf.mxu0  ;;  %v1903_v33 = vpop.eup %1902  ;;  %v1438_v13 = vmul.f32 %v1422_v49, %v1374_v14  ;;  %v1334_v50 = vmul.f32 0.5, %v1901_v44  ;;  %v1363_v44 = vadd.f32 0.5, %v2659_v40  ;;  %v1427_v14 = vld [vmem:[%s2912_s1 + $0x48] sm:$0xff] }
 0x143   :  { %1924 = vtanh.f32 %v982_v23  ;;  %v1450_v25 = vmul.f32 %v1903_v33, %v2630_v2  ;;  %v2684_v42 = vpop.f32.mrf.mxu1 }
 0x144   :  { %v1905_v61 = vpop.eup %1904  ;;  %1926 = vtanh.f32 %v1247_v29  ;;  %v2686_v48 = vpop.f32.mrf.mxu0  ;;  %v1255_v29 = vmul.f32 0.5, %v962_v46  ;;  %v1382_v55 = vadd.f32 0.5, %v1334_v50 }
 0x145   :  { %v1907_v56 = vpop.eup %1906  ;;  %1928 = vtanh.f32 %v1250_v31  ;;  %v1451_v37 = vmul.f32 %v1905_v61, %v2636_v43  ;;  %v1466_v41 = vadd.f32 %v1450_v25, %v1434_v6  ;;  %v2692_v2 = vpop.f32.mrf.mxu1  ;;  %v1426_v43 = vld [vmem:[%s2912_s1 + $0x40] sm:$0xff]  ;;  %v1366_v61 = vadd.f32 0.5, %v2667_v36 }
 0x146   :  { %v1909_v53 = vpop.eup %1908  ;;  %v2694_v20 = vpop.f32.mrf.mxu0  ;;  %1930 = vtanh.f32 %v1251_v16  ;;  %v1335_v1 = vmul.f32 0.5, %v1907_v56  ;;  %v1442_v26 = vmul.f32 %v1426_v43, %v1378_v62  ;;  %v1367_v36 = vadd.f32 0.5, %v1319_v32 }
 0x147   :  { %v1467_v63 = vadd.f32 %v1451_v37, %v1435_v45  ;;  %v1454_v22 = vmul.f32 %v1909_v53, %v2639_v35  ;;  %1932 = vtanh.f32 %v1466_v41  ;;  %1530 = vst [vmem:[%s2913_s4] sm:$0xff] %v1466_v41  ;;  %v2703_v19 = vpop.f32.mrf.mxu1  ;;  %v1443_v45 = vmul.f32 %v1427_v14, %v1379_v3 }
 0x148   :  { %v1911_v30 = vpop.eup %1910  ;;  %v1137_v8 = vpop.f32.mrf.mxu0  ;;  %v1383_v10 = vadd.f32 0.5, %v1335_v1 }
 0x149   :  { %1934 = vtanh.f32 %v1467_v63  ;;  %1531 = vst [vmem:[%s2913_s4 + $0x8] sm:$0xff] %v1467_v63  ;;  %v1470_v35 = vadd.f32 %v1454_v22, %v1438_v13  ;;  %v1455_v31 = vmul.f32 %v1911_v30, %v2641_v11  ;;  %v2714_v33 = vpop.f32.mrf.mxu1  ;;  %v1430_v11 = vld [vmem:[%s2912_s1 + $0x60] sm:$0xff]  ;;  %v1132_v13 = vadd.f32 %v2676_v24, %v2575_v54 }
 0x14a   :  { %v1913_v23 = vpop.eup %1912  ;;  %1936 = vtanh.f32 %v1254_v27  ;;  %v1141_v6 = vpop.f32.mrf.mxu0  ;;  %v1446_v53 = vmul.f32 %v1430_v11, %v1382_v55  ;;  %v1134_v22 = vadd.f32 %v2686_v48, %v2579_v60  ;;  %v1136_v54 = vadd.f32 %v2694_v20, %v2583_v47 }
 0x14b   :  { %v1915_v49 = vpop.eup %1914  ;;  %1938 = vtanh.f32 %v1470_v35  ;;  %1534 = vst [vmem:[%s2913_s4 + $0x20] sm:$0xff] %v1470_v35  ;;  %v1471_v17 = vadd.f32 %v1455_v31, %v1439_v0  ;;  %v1458_v40 = vmul.f32 %v1913_v23, %v2650_v57  ;;  %v2724_v46 = vpop.f32.mrf.mxu1  ;;  %v1447_v0 = vmul.f32 %v1431_v51, %v1383_v10 }
 0x14c   :  { %v1917_v16 = vpop.eup %1916  ;;  %1940 = vtanh.f32 %v1255_v29  ;;  %v1143_v25 = vpop.f32.mrf.mxu0  ;;  %v1338_v43 = vmul.f32 0.5, %v1915_v49  ;;  %v1138_v60 = vadd.f32 %v1137_v8, %v2588_v15  ;;  %v1142_v32 = vadd.f32 %v1141_v6, %v2594_v5 }
 0x14d   :  { %v1919_v56 = vpop.eup %1918  ;;  %1942 = vtanh.f32 %v1471_v17  ;;  %1535 = vst [vmem:[%s2913_s4 + $0x28] sm:$0xff] %v1471_v17  ;;  %v1474_v57 = vadd.f32 %v1458_v40, %v1442_v26  ;;  %v1459_v52 = vmul.f32 %v1917_v16, %v1363_v44  ;;  %v2734_v50 = vpop.f32.mrf.mxu1  ;;  %v1212_v44 = vmul.f32 0.5, %v1132_v13 }
 0x14e   :  { %v1921_v37 = vpop.eup %1920  ;;  %v2736_v27 = vpop.f32.mrf.mxu0  ;;  %v1339_v1 = vmul.f32 0.5, %v1919_v56  ;;  %v1213_v55 = vmul.f32 0.5, %v1134_v22  ;;  %v1386_v11 = vadd.f32 0.5, %v1338_v43  ;;  %v1216_v17 = vmul.f32 0.5, %v1136_v54 }
 0x14f   :  { %v1923_v41 = vpop.eup %1922  ;;  %1944 = vtanh.f32 %v1474_v57  ;;  %1538 = vst [vmem:[%s2913_s4 + $0x40] sm:$0xff] %v1474_v57  ;;  %v1475_v62 = vadd.f32 %v1459_v52, %v1443_v45  ;;  %v1462_v63 = vmul.f32 %v1921_v37, %v1366_v61  ;;  %v2745_v24 = vpop.f32.mrf.mxu1  ;;  %v1217_v61 = vmul.f32 0.5, %v1138_v60 }
 0x150   :  { %v1925_v30 = vpop.eup %1924  ;;  %v2747_v29 = vpop.f32.mrf.mxu0  ;;  %v1342_v23 = vmul.f32 0.5, %v1923_v41  ;;  %v1387_v15 = vadd.f32 0.5, %v1339_v1  ;;  %v1220_v45 = vmul.f32 0.5, %v1142_v32  ;;  %v1144_v51 = vadd.f32 %v1143_v25, %v2600_v34 }
 0x151   :  { %v1927_v3 = vpop.eup %1926  ;;  %1946 = vtanh.f32 %v1475_v62  ;;  %1539 = vst [vmem:[%s2913_s4 + $0x48] sm:$0xff] %v1475_v62  ;;  %v1478_v35 = vadd.f32 %v1462_v63, %v1446_v53  ;;  %v1463_v31 = vmul.f32 %v1925_v30, %v1367_v36  ;;  %v2754_v47 = vpop.f32.mrf.mxu1 }
 0x152   :  { %v1929_v48 = vpop.eup %1928  ;;  %v1151_v20 = vpop.f32.mrf.mxu0  ;;  %v1343_v8 = vmul.f32 0.5, %v1927_v3  ;;  %v1390_v36 = vadd.f32 0.5, %v1342_v23 }
 0x153   :  { %1948 = vtanh.f32 %v1478_v35  ;;  %1542 = vst [vmem:[%s2913_s4 + $0x60] sm:$0xff] %v1478_v35  ;;  %v1479_v14 = vadd.f32 %v1463_v31, %v1447_v0  ;;  %v1152_v49 = vadd.f32 %v1151_v20, %v2614_v12  ;;  %v1931_v26 = vpop.eup %1930  ;;  %v2760_v40 = vpop.f32.mrf.mxu1  ;;  %v1346_v16 = vmul.f32 0.5, %v1929_v48 }
 0x154   :  { %v1153_v5 = vpop.f32.mrf.mxu0  ;;  %v1933_v6 = vpop.eup %1932  ;;  %v1391_v62 = vadd.f32 0.5, %v1343_v8  ;;  %v1347_v63 = vmul.f32 0.5, %v1931_v26  ;;  %v1221_v35 = vmul.f32 0.5, %v1144_v51  ;;  %v1146_v48 = vadd.f32 %v2736_v27, %v2605_v28 }
 0x155   :  { %1950 = vtanh.f32 %v1479_v14  ;;  %1543 = vst [vmem:[%s2913_s4 + $0x68] sm:$0xff] %v1479_v14  ;;  %v1154_v10 = vadd.f32 %v1153_v5, %v2617_v58  ;;  %v1498_v12 = vmul.f32 %v1933_v6, %v1386_v11  ;;  %v2767_v57 = vpop.f32.mrf.mxu1  ;;  %v1228_v13 = vmul.f32 0.5, %v1152_v49 }
 0x156   :  { %v1935_v56 = vpop.eup %1934  ;;  %1952 = vtanh.f32 %v1212_v44  ;;  %v1155_v52 = vpop.f32.mrf.mxu0  ;;  %v1394_v54 = vadd.f32 0.5, %v1346_v16  ;;  %v1395_v44 = vadd.f32 0.5, %v1347_v63  ;;  %v1148_v20 = vadd.f32 %v2747_v29, %v2610_v39 }
 0x157   :  { %v1937_v37 = vpop.eup %1936  ;;  %v1499_v53 = vmul.f32 %v1935_v56, %v1387_v15  ;;  %1954 = vtanh.f32 %v1213_v55  ;;  %1514 = vst [vmem:[%s2914_s3] sm:$0xff] %v1498_v12  ;;  %v2772_v58 = vpop.f32.mrf.mxu1  ;;  %v1156_v34 = vadd.f32 %v1155_v52, %v2622_v38  ;;  %v1229_v0 = vmul.f32 0.5, %v1154_v10 }
 0x158   :  { %v1939_v41 = vpop.eup %1938  ;;  %1956 = vtanh.f32 %v1216_v17  ;;  %v1157_v25 = vpop.f32.mrf.mxu0  ;;  %v1350_v3 = vmul.f32 0.5, %v1937_v37  ;;  %v1224_v29 = vmul.f32 0.5, %v1146_v48  ;;  %v1225_v12 = vmul.f32 0.5, %v1148_v20 }
 0x159   :  { %v1941_v22 = vpop.eup %1940  ;;  %1515 = vst [vmem:[%s2914_s3 + $0x8] sm:$0xff] %v1499_v53  ;;  %v1502_v30 = vmul.f32 %v1939_v41, %v1390_v36  ;;  %1958 = vtanh.f32 %v1217_v61  ;;  %v1158_v43 = vadd.f32 %v1157_v25, %v2627_v21  ;;  %v2779_v31 = vpop.f32.mrf.mxu1  ;;  %v1232_v14 = vmul.f32 0.5, %v1156_v34 }
 0x15a   :  { %v1943_v1 = vpop.eup %1942  ;;  %1960 = vtanh.f32 %v1220_v45  ;;  %v1161_v60 = vpop.f32.mrf.mxu0  ;;  %v1351_v32 = vmul.f32 0.5, %v1941_v22  ;;  %v1398_v17 = vadd.f32 0.5, %v1350_v3 }
 0x15b   :  { %1518 = vst [vmem:[%s2914_s3 + $0x20] sm:$0xff] %v1502_v30  ;;  %v1503_v38 = vmul.f32 %v1943_v1, %v1391_v62  ;;  %1962 = vtanh.f32 %v1228_v13  ;;  %v1162_v23 = vadd.f32 %v1161_v60, %v2634_v4  ;;  %v2789_v55 = vpop.f32.mrf.mxu1  ;;  %v1233_v28 = vmul.f32 0.5, %v1158_v43 }
 0x15c   :  { %v1945_v21 = vpop.eup %1944  ;;  %v1163_v49 = vpop.f32.mrf.mxu0  ;;  %1964 = vtanh.f32 %v1229_v0  ;;  %v1399_v6 = vadd.f32 0.5, %v1351_v32 }
 0x15d   :  { %1519 = vst [vmem:[%s2914_s3 + $0x28] sm:$0xff] %v1503_v38  ;;  %v1506_v26 = vmul.f32 %v1945_v21, %v1394_v54  ;;  %v1164_v27 = vadd.f32 %v1163_v49, %v2645_v18  ;;  %v1236_v11 = vmul.f32 0.5, %v1162_v23  ;;  %v2795_v15 = vpop.f32.mrf.mxu1  ;;  %1966 = vtanh.f32 %v1221_v35 }
 0x15e   :  { %v1947_v4 = vpop.eup %1946  ;;  %v1165_v8 = vpop.f32.mrf.mxu0  ;;  %1968 = vtanh.f32 %v1232_v14 }
 0x15f   :  { %1522 = vst [vmem:[%s2914_s3 + $0x40] sm:$0xff] %v1506_v26  ;;  %v1507_v39 = vmul.f32 %v1947_v4, %v1395_v44  ;;  %v1237_v16 = vmul.f32 0.5, %v1164_v27  ;;  %v2800_v61 = vpop.f32.mrf.mxu1  ;;  %v1166_v18 = vadd.f32 %v1165_v8, %v2652_v59  ;;  %1970 = vtanh.f32 %v1233_v28 }
 0x160   :  { %v1949_v5 = vpop.eup %1948  ;;  %v1167_v10 = vpop.f32.mrf.mxu0  ;;  %1972 = vtanh.f32 %v1236_v11 }
 0x161   :  { %1523 = vst [vmem:[%s2914_s3 + $0x48] sm:$0xff] %v1507_v39  ;;  %v1510_v56 = vmul.f32 %v1949_v5, %v1398_v17  ;;  %v1168_v45 = vadd.f32 %v1167_v10, %v2664_v7  ;;  %v1191_v52 = vpop.f32.mrf.mxu1  ;;  %1974 = vtanh.f32 %v1224_v29  ;;  %v1240_v41 = vmul.f32 0.5, %v1166_v18 }
 0x162   :  { %v1951_v51 = vpop.eup %1950  ;;  %v1171_v37 = vpop.f32.mrf.mxu0  ;;  %v1192_v53 = vadd.f32 %v1191_v52, %v2754_v47  ;;  %1976 = vtanh.f32 %v1237_v16 }
 0x163   :  { %v1953_v36 = vpop.eup %1952  ;;  %1526 = vst [vmem:[%s2914_s3 + $0x60] sm:$0xff] %v1510_v56  ;;  %v1511_v59 = vmul.f32 %v1951_v51, %v1399_v6  ;;  %v1193_v62 = vpop.f32.mrf.mxu1  ;;  %1978 = vtanh.f32 %v1225_v12  ;;  %v1241_v7 = vmul.f32 0.5, %v1168_v45  ;;  %v1172_v3 = vadd.f32 %v1171_v37, %v2674_v9 }
 0x164   :  { %v1955_v13 = vpop.eup %1954  ;;  %v1173_v63 = vpop.f32.mrf.mxu0  ;;  %v1194_v25 = vadd.f32 %v1193_v62, %v2760_v40  ;;  %1980 = vtanh.f32 %v1192_v53  ;;  %v1308_v47 = vmul.f32 0.5, %v1953_v36 }
 0x165   :  { %v1957_v34 = vpop.eup %1956  ;;  %1527 = vst [vmem:[%s2914_s3 + $0x68] sm:$0xff] %v1511_v59  ;;  %v1195_v30 = vpop.f32.mrf.mxu1  ;;  %v1309_v54 = vmul.f32 0.5, %v1955_v13  ;;  %v1174_v48 = vadd.f32 %v1173_v63, %v2684_v42  ;;  %v1244_v4 = vmul.f32 0.5, %v1172_v3  ;;  %v1421_v63 = vld [vmem:[%s2912_s1 + $0x18] sm:$0xff] }
 0x166   :  { %v1959_v22 = vpop.eup %1958  ;;  %v1175_v0 = vpop.f32.mrf.mxu0  ;;  %1982 = vtanh.f32 %v1194_v25  ;;  %v1196_v35 = vadd.f32 %v1195_v30, %v2767_v57  ;;  %v1312_v21 = vmul.f32 0.5, %v1957_v34  ;;  %v1356_v28 = vadd.f32 0.5, %v1308_v47 }
 0x167   :  { %v1961_v43 = vpop.eup %1960  ;;  %1984 = vtanh.f32 %v1240_v41  ;;  %v1197_v60 = vpop.f32.mrf.mxu1  ;;  %v1313_v44 = vmul.f32 0.5, %v1959_v22  ;;  %v1176_v32 = vadd.f32 %v1175_v0, %v2692_v2  ;;  %v1357_v27 = vadd.f32 0.5, %v1309_v54 }
 0x168   :  { %v1963_v1 = vpop.eup %1962  ;;  %v1177_v38 = vpop.f32.mrf.mxu0  ;;  %1986 = vtanh.f32 %v1241_v7  ;;  %v1198_v40 = vadd.f32 %v1197_v60, %v2772_v58  ;;  %v1316_v49 = vmul.f32 0.5, %v1961_v43  ;;  %v1245_v39 = vmul.f32 0.5, %v1174_v48 }
 0x169   :  { %v1965_v23 = vpop.eup %1964  ;;  %1988 = vtanh.f32 %v1196_v35  ;;  %v1201_v20 = vpop.f32.mrf.mxu1  ;;  %v1324_v26 = vmul.f32 0.5, %v1963_v1  ;;  %v1178_v42 = vadd.f32 %v1177_v38, %v2703_v19  ;;  %v2823_v5 = vadd.f32 0.5, %v1312_v21  ;;  %v1424_v35 = vld [vmem:[%s2912_s1 + $0x30] sm:$0xff] }
 0x16a   :  { %v1181_v14 = vpop.f32.mrf.mxu0  ;;  %1990 = vtanh.f32 %v1198_v40  ;;  %v1202_v9 = vadd.f32 %v1201_v20, %v2779_v31  ;;  %v1967_v57 = vpop.eup %1966  ;;  %v1325_v17 = vmul.f32 0.5, %v1965_v23  ;;  %v2825_v6 = vadd.f32 0.5, %v1313_v44  ;;  %v1428_v20 = vld [vmem:[%s2912_s1 + $0x50] sm:$0xff] }
 0x16b   :  { %v1203_v58 = vpop.f32.mrf.mxu1  ;;  %v1969_v8 = vpop.eup %1968  ;;  %v1248_v31 = vmul.f32 0.5, %v1176_v32  ;;  %v1182_v16 = vadd.f32 %v1181_v14, %v2714_v33  ;;  %v2828_v56 = vadd.f32 0.5, %v1316_v49  ;;  %v1372_v19 = vadd.f32 0.5, %v1324_v26 }
 0x16c   :  { %v1183_v11 = vpop.f32.mrf.mxu0  ;;  %1992 = vtanh.f32 %v1202_v9  ;;  %v1204_v2 = vadd.f32 %v1203_v58, %v2789_v55  ;;  %v1971_v29 = vpop.eup %1970  ;;  %v1420_v55 = vld [vmem:[%s2912_s1 + $0x10] sm:$0xff]  ;;  %v1328_v52 = vmul.f32 0.5, %v1969_v8  ;;  %v1249_v37 = vmul.f32 0.5, %v1178_v42 }
 0x16d   :  { %v1205_v18 = vpop.f32.mrf.mxu1  ;;  %v1973_v10 = vpop.eup %1972  ;;  %v1184_v12 = vadd.f32 %v1183_v11, %v2724_v46  ;;  %v1373_v53 = vadd.f32 0.5, %v1325_v17  ;;  %v1329_v13 = vmul.f32 0.5, %v1971_v29  ;;  %v1317_v46 = vmul.f32 0.5, %v1967_v57 }
 0x16e   :  { %1994 = vtanh.f32 %v1204_v2  ;;  %v1185_v45 = vpop.f32.mrf.mxu0  ;;  %v1975_v51 = vpop.eup %1974  ;;  %v1206_v36 = vadd.f32 %v1205_v18, %v2795_v15  ;;  %v1332_v34 = vmul.f32 0.5, %v1973_v10  ;;  %v1252_v7 = vmul.f32 0.5, %v1182_v16 }
 0x16f   :  { %1996 = vtanh.f32 %v1244_v4  ;;  %v1207_v33 = vpop.f32.mrf.mxu1  ;;  %v1977_v59 = vpop.eup %1976  ;;  %v1436_v22 = vmul.f32 %v1420_v55, %v1372_v19  ;;  %v1253_v30 = vmul.f32 0.5, %v1184_v12  ;;  %v1186_v15 = vadd.f32 %v1185_v45, %v2734_v50  ;;  %v1425_v50 = vld [vmem:[%s2912_s1 + $0x38] sm:$0xff] }
 0x170   :  { %1998 = vtanh.f32 %v1245_v39  ;;  %v1208_v41 = vadd.f32 %v1207_v33, %v2800_v61  ;;  %v1979_v62 = vpop.eup %1978  ;;  %v1187_v0 = vpop.f32.mrf.mxu0  ;;  %v1376_v47 = vadd.f32 0.5, %v1328_v52  ;;  %v1333_v1 = vmul.f32 0.5, %v1977_v59  ;;  %v1433_v59 = vld [vmem:[%s2912_s1 + $0x78] sm:$0xff] }
 0x171   :  { %2000 = vtanh.f32 %v1248_v31  ;;  %v1981_v25 = vpop.eup %1980  ;;  %v1437_v3 = vmul.f32 %v1421_v63, %v1373_v53  ;;  %v1377_v60 = vadd.f32 0.5, %v1329_v13  ;;  %v1380_v40 = vadd.f32 0.5, %v1332_v34 }
 0x172   :  { %2002 = vtanh.f32 %v1206_v36  ;;  %v1452_v61 = vmul.f32 %v1981_v25, %v1356_v28  ;;  %v1188_v21 = vadd.f32 %v1187_v0, %v2745_v24  ;;  %v1365_v32 = vadd.f32 0.5, %v1317_v46 }
 0x173   :  { %v1983_v43 = vpop.eup %1982  ;;  %2004 = vtanh.f32 %v1249_v37  ;;  %v1256_v49 = vmul.f32 0.5, %v1186_v15  ;;  %v1440_v9 = vmul.f32 %v1424_v35, %v1376_v47  ;;  %v1381_v57 = vadd.f32 0.5, %v1333_v1 }
 0x174   :  { %v1985_v54 = vpop.eup %1984  ;;  %v1453_v38 = vmul.f32 %v1983_v43, %v1357_v27  ;;  %2006 = vtanh.f32 %v1208_v41  ;;  %v1468_v23 = vadd.f32 %v1452_v61, %v1436_v22  ;;  %v1441_v24 = vmul.f32 %v1425_v50, %v1377_v60  ;;  %v1429_v27 = vld [vmem:[%s2912_s1 + $0x58] sm:$0xff] }
 0x175   :  { %v1987_v48 = vpop.eup %1986  ;;  %2008 = vtanh.f32 %v1252_v7  ;;  %v1336_v4 = vmul.f32 0.5, %v1985_v54  ;;  %v1320_v11 = vmul.f32 0.5, %v1975_v51  ;;  %v1444_v8 = vmul.f32 %v1428_v20, %v1380_v40 }
 0x176   :  { %v1989_v44 = vpop.eup %1988  ;;  %v1469_v14 = vadd.f32 %v1453_v38, %v1437_v3  ;;  %2010 = vtanh.f32 %v1253_v30  ;;  %1532 = vst [vmem:[%s2913_s4 + $0x10] sm:$0xff] %v1468_v23  ;;  %v1257_v39 = vmul.f32 0.5, %v1188_v21  ;;  %v1337_v2 = vmul.f32 0.5, %v1987_v48 }
 0x177   :  { %v1991_v26 = vpop.eup %1990  ;;  %2012 = vtanh.f32 %v1468_v23  ;;  %v1456_v28 = vmul.f32 %v1989_v44, %v2823_v5  ;;  %v1321_v16 = vmul.f32 0.5, %v1979_v62  ;;  %v1445_v18 = vmul.f32 %v1429_v27, %v1381_v57 }
 0x178   :  { %2014 = vtanh.f32 %v1469_v14  ;;  %1533 = vst [vmem:[%s2913_s4 + $0x18] sm:$0xff] %v1469_v14  ;;  %v1457_v42 = vmul.f32 %v1991_v26, %v2825_v6  ;;  %v1384_v6 = vadd.f32 0.5, %v1336_v4  ;;  %v1368_v55 = vadd.f32 0.5, %v1320_v11 }
 0x179   :  { %v1993_v58 = vpop.eup %1992  ;;  %v1472_v17 = vadd.f32 %v1456_v28, %v1440_v9  ;;  %2016 = vtanh.f32 %v1256_v49  ;;  %v1385_v52 = vadd.f32 0.5, %v1337_v2  ;;  %v1369_v33 = vadd.f32 0.5, %v1321_v16 }
 0x17a   :  { %v1473_v29 = vadd.f32 %v1457_v42, %v1441_v24  ;;  %v1460_v5 = vmul.f32 %v1993_v58, %v2828_v56  ;;  %v1432_v56 = vld [vmem:[%s2912_s1 + $0x70] sm:$0xff] }
 0x17b   :  { %v1995_v31 = vpop.eup %1994  ;;  %2018 = vtanh.f32 %v1472_v17  ;;  %1536 = vst [vmem:[%s2913_s4 + $0x30] sm:$0xff] %v1472_v17  ;;  %v1448_v41 = vmul.f32 %v1432_v56, %v1384_v6  ;;  %v1449_v7 = vmul.f32 %v1433_v59, %v1385_v52 }
 0x17c   :  { %v1997_v10 = vpop.eup %1996  ;;  %2020 = vtanh.f32 %v1473_v29  ;;  %1537 = vst [vmem:[%s2913_s4 + $0x38] sm:$0xff] %v1473_v29  ;;  %v1476_v19 = vadd.f32 %v1460_v5, %v1444_v8  ;;  %v1461_v12 = vmul.f32 %v1995_v31, %v1365_v32 }
 0x17d   :  { %v1999_v45 = vpop.eup %1998  ;;  %2022 = vtanh.f32 %v1257_v39  ;;  %v1340_v53 = vmul.f32 0.5, %v1997_v10 }
 0x17e   :  { %v2001_v51 = vpop.eup %2000  ;;  %2024 = vtanh.f32 %v1476_v19  ;;  %1540 = vst [vmem:[%s2913_s4 + $0x50] sm:$0xff] %v1476_v19  ;;  %v1477_v37 = vadd.f32 %v1461_v12, %v1445_v18  ;;  %v1341_v62 = vmul.f32 0.5, %v1999_v45 }
 0x17f   :  { %v2003_v36 = vpop.eup %2002  ;;  %v1388_v15 = vadd.f32 0.5, %v1340_v53  ;;  %v1344_v0 = vmul.f32 0.5, %v2001_v51 }
 0x180   :  { %v2005_v13 = vpop.eup %2004  ;;  %2026 = vtanh.f32 %v1477_v37  ;;  %1541 = vst [vmem:[%s2913_s4 + $0x58] sm:$0xff] %v1477_v37  ;;  %v1464_v46 = vmul.f32 %v2003_v36, %v1368_v55  ;;  %v1389_v47 = vadd.f32 0.5, %v1341_v62 }
 0x181   :  { %v2007_v63 = vpop.eup %2006  ;;  %v1345_v1 = vmul.f32 0.5, %v2005_v13  ;;  %v1392_v48 = vadd.f32 0.5, %v1344_v0 }
 0x182   :  { %v2009_v34 = vpop.eup %2008  ;;  %v1480_v25 = vadd.f32 %v1464_v46, %v1448_v41  ;;  %v1465_v22 = vmul.f32 %v2007_v63, %v1369_v33 }
 0x183   :  { %v2011_v30 = vpop.eup %2010  ;;  %v1348_v60 = vmul.f32 0.5, %v2009_v34  ;;  %v1393_v40 = vadd.f32 0.5, %v1345_v1 }
 0x184   :  { %v2013_v43 = vpop.eup %2012  ;;  %2028 = vtanh.f32 %v1480_v25  ;;  %1544 = vst [vmem:[%s2913_s4 + $0x70] sm:$0xff] %v1480_v25  ;;  %v1481_v61 = vadd.f32 %v1465_v22, %v1449_v7  ;;  %v1349_v23 = vmul.f32 0.5, %v2011_v30 }
 0x185   :  { %v2015_v54 = vpop.eup %2014  ;;  %v1500_v3 = vmul.f32 %v2013_v43, %v1388_v15  ;;  %v1396_v14 = vadd.f32 0.5, %v1348_v60 }
 0x186   :  { %v1501_v35 = vmul.f32 %v2015_v54, %v1389_v47  ;;  %2030 = vtanh.f32 %v1481_v61  ;;  %1545 = vst [vmem:[%s2913_s4 + $0x78] sm:$0xff] %v1481_v61  ;;  %v2017_v38 = vpop.eup %2016  ;;  %v1397_v9 = vadd.f32 0.5, %v1349_v23 }
 0x187   :  { %1516 = vst [vmem:[%s2914_s3 + $0x10] sm:$0xff] %v1500_v3  ;;  %v1352_v57 = vmul.f32 0.5, %v2017_v38 }
 0x188   :  { %v2019_v50 = vpop.eup %2018  ;;  %1517 = vst [vmem:[%s2914_s3 + $0x18] sm:$0xff] %v1501_v35 }
 0x189   :  { %v2021_v21 = vpop.eup %2020  ;;  %v1504_v44 = vmul.f32 %v2019_v50, %v1392_v48  ;;  %v1400_v4 = vadd.f32 0.5, %v1352_v57 }
 0x18a   :  { %v2023_v32 = vpop.eup %2022  ;;  %v1505_v20 = vmul.f32 %v2021_v21, %v1393_v40 }
 0x18b   :  { %v2025_v49 = vpop.eup %2024  ;;  %1520 = vst [vmem:[%s2914_s3 + $0x30] sm:$0xff] %v1504_v44  ;;  %v1353_v27 = vmul.f32 0.5, %v2023_v32 }
 0x18c   :  { %1521 = vst [vmem:[%s2914_s3 + $0x38] sm:$0xff] %v1505_v20  ;;  %v1508_v26 = vmul.f32 %v2025_v49, %v1396_v14 }
 0x18d   :  { %v2027_v28 = vpop.eup %2026  ;;  %v1401_v11 = vadd.f32 0.5, %v1353_v27 }
 0x18e   :  { %1524 = vst [vmem:[%s2914_s3 + $0x50] sm:$0xff] %v1508_v26  ;;  %v1509_v24 = vmul.f32 %v2027_v28, %v1397_v9 }
 0x190   :  { %1525 = vst [vmem:[%s2914_s3 + $0x58] sm:$0xff] %v1509_v24 }
 0x191   :  { %v2029_v42 = vpop.eup %2028 }
 0x192   :  { %v1512_v58 = vmul.f32 %v2029_v42, %v1400_v4 }
 0x193   :  { %v2031_v8 = vpop.eup %2030 }
 0x194   :  { %1528 = vst [vmem:[%s2914_s3 + $0x70] sm:$0xff] %v1512_v58  ;;  %v1513_v17 = vmul.f32 %v2031_v8, %v1401_v11 }
 0x196   :  { %1529 = vst [vmem:[%s2914_s3 + $0x78] sm:$0xff] %v1513_v17 }

</bundles_post_ra>
